<compile_context>
chip_gen: v5e
topology: v5e:2x2
jax: 0.10.0
libtpu: 0.0.40
codegen_flags: <defaults>
</compile_context>

<pallas_src>
import functools

import jax
import jax.numpy as jnp
from jax.experimental import pallas as pl
from jax.experimental.pallas import tpu as pltpu


def _round_up(x, m):
    return ((x + m - 1) // m) * m


def rnn_recurrence_kernel(x_ref, wx_ref, wh_ref, b_ref, out_ref, h_scratch,
                          *, t_chunk, unroll):
    # x_ref:     (T_CHUNK, BT, Ip)  raw inputs, bf16
    # wx_ref:    (Ip, Hp)           input->hidden weight, bf16 (resident)
    # wh_ref:    (Hp, Hp)           hidden->hidden weight, bf16 (resident)
    # b_ref:     (1, Hp)            bias, f32 (resident)
    # out_ref:   (T_CHUNK, BT, Hp)  hidden-state history for this chunk, f32
    # h_scratch: (BT, Hp)           recurrent state (bf16), persists across grid steps
    ci = pl.program_id(1)  # time-chunk index (inner, "arbitrary"/serial axis)

    @pl.when(ci == 0)
    def _():
        # h_0 = zeros for each (core-private) batch tile.
        h_scratch[...] = jnp.zeros_like(h_scratch)

    wx = wx_ref[...]       # bf16, held for the whole chunk
    wh = wh_ref[...]       # bf16, held for the whole chunk
    bias = b_ref[...]      # (1, Hp) f32, broadcasts over the batch tile

    def step(t, h):
        # Fused input projection: independent of h, overlaps the previous
        # step's tanh/EUP drain on the MXU.
        xw = jnp.dot(x_ref[t], wx, preferred_element_type=jnp.float32)
        # Serial part: one (BT, Hp) x (Hp, Hp) MXU pass on the carried state.
        hw = jnp.dot(h, wh, preferred_element_type=jnp.float32)
        h_new = jnp.tanh(xw + hw + bias)       # f32 activation
        out_ref[t] = h_new                     # lane-dense f32 store
        return h_new.astype(jnp.bfloat16)      # carry stays bf16

    h_final = jax.lax.fori_loop(0, t_chunk, step, h_scratch[...], unroll=unroll)
    h_scratch[...] = h_final


def rnn_forward(X, W, b, *, max_t_chunk=128):
    """X: (B, S, I); W: (H, I+H) as in nn.Linear(input+hidden, hidden); b: (H,)."""
    B, S, I = X.shape
    H = W.shape[0]
    assert W.shape == (H, I + H)

    # cat(x, h) @ W^T == x @ Wx^T + h @ Wh^T
    Wx_t = jnp.transpose(W[:, :I])  # (I, H)
    Wh_t = jnp.transpose(W[:, I:])  # (H, H)

    # ---- tile / pad geometry -------------------------------------------------
    Hp = _round_up(H, 128)                 # lane-dense hidden
    Ip = _round_up(I, 128)                 # lane-dense input
    Bp = _round_up(max(B, 8), 8)           # sublane-dense batch

    # Batch tile: prefer >=2 tiles (v7x megacore), keep tiles sublane-aligned.
    if Bp <= 8:
        BT = Bp
    else:
        BT = max(8, min(128, (Bp // 2) // 8 * 8))
    Bp = _round_up(Bp, BT)

    # ---- VMEM-driven time-chunk sizing ---------------------------------------
    try:
        vmem_cap = int(pltpu.get_tpu_info().vmem_capacity_bytes)
    except Exception:
        vmem_cap = 64 * 1024 * 1024        # conservative fallback (v7x per-TC)
    budget = int(0.70 * vmem_cap)
    # Resident (pipeline double-buffered) weights + bias + bf16 hidden scratch.
    fixed_bytes = 2 * (Hp * Hp * 2) + 2 * (Ip * Hp * 2) + 2 * (Hp * 4) + BT * Hp * 2
    # Streamed, double-buffered per-timestep bytes: bf16 x in + f32 history out.
    per_t_bytes = BT * (2 * Ip * 2 + 2 * Hp * 4)
    t_fit = max(1, (budget - fixed_bytes) // per_t_bytes)
    T_CHUNK = int(max(1, min(S, max_t_chunk, t_fit)))
    S_pad = _round_up(S, T_CHUNK)
    unroll = T_CHUNK if T_CHUNK <= 16 else 8

    vmem_needed = fixed_bytes + per_t_bytes * T_CHUNK
    vmem_limit = max(32 * 1024 * 1024, int(1.25 * vmem_needed) + (2 << 20))
    vmem_limit = min(vmem_limit, int(0.92 * vmem_cap))

    # ---- operand prep (one fused transpose+cast+pad pass over X; no XW) ------
    X_p = jnp.pad(jnp.transpose(X, (1, 0, 2)).astype(jnp.bfloat16),
                  ((0, S_pad - S), (0, Bp - B), (0, Ip - I)))        # (S_pad, Bp, Ip)
    Wx_p = jnp.pad(Wx_t, ((0, Ip - I), (0, Hp - H))).astype(jnp.bfloat16)
    Wh_p = jnp.pad(Wh_t, ((0, Hp - H), (0, Hp - H))).astype(jnp.bfloat16)
    b_p = jnp.pad(b.astype(jnp.float32), (0, Hp - H)).reshape(1, Hp)

    kernel = functools.partial(rnn_recurrence_kernel, t_chunk=T_CHUNK, unroll=unroll)

    out_padded = pl.pallas_call(
        kernel,
        out_shape=jax.ShapeDtypeStruct((S_pad, Bp, Hp), jnp.float32),
        grid_spec=pltpu.PrefetchScalarGridSpec(
            num_scalar_prefetch=0,
            grid=(Bp // BT, S_pad // T_CHUNK),  # (batch tiles, time chunks)
            in_specs=[
                pl.BlockSpec((T_CHUNK, BT, Ip), lambda bi, ci: (ci, bi, 0)),
                pl.BlockSpec((Ip, Hp), lambda bi, ci: (0, 0)),   # Wx resident
                pl.BlockSpec((Hp, Hp), lambda bi, ci: (0, 0)),   # Wh resident
                pl.BlockSpec((1, Hp), lambda bi, ci: (0, 0)),    # bias resident
            ],
            out_specs=pl.BlockSpec((T_CHUNK, BT, Hp), lambda bi, ci: (ci, bi, 0)),
            scratch_shapes=[pltpu.VMEM((BT, Hp), jnp.bfloat16)],
        ),
        compiler_params=pltpu.CompilerParams(
            # batch tiles are independent (megacore); time chunks are serial
            dimension_semantics=("parallel", "arbitrary"),
            vmem_limit_bytes=vmem_limit,
        ),
    )(X_p, Wx_p, Wh_p, b_p)

    return out_padded[:S, :B, :H]


def rnn_reference(X, W, b):
    """Pure-JAX f32 reference mirroring the PyTorch forward exactly."""
    B, S, I = X.shape
    H = W.shape[0]
    Xs = jnp.transpose(X, (1, 0, 2))  # (S, B, I)
    h = jnp.zeros((B, H), jnp.float32)

    def step(h, x):
        h_new = jnp.tanh(jnp.concatenate([x, h], axis=1) @ W.T + b)
        return h_new, h_new

    _, hist = jax.lax.scan(step, h, Xs)
    return hist  # (S, B, H)


if __name__ == "__main__":
    # Small shapes consistent with the module: batch=2, seq=8, input=4, hidden=32.
    B, S, I, H = 2, 8, 4, 32

    key = jax.random.PRNGKey(0)
    kx, kw, kb = jax.random.split(key, 3)

    X = jax.random.normal(kx, (B, S, I), dtype=jnp.float32)

    # Deterministic parameter init (uniform, akin to nn.Linear's default range).
    bound = 1.0 / jnp.sqrt(jnp.float32(I + H))
    W = jax.random.uniform(kw, (H, I + H), jnp.float32, -bound, bound)
    b = jax.random.uniform(kb, (H,), jnp.float32, -bound, bound)

    fwd = jax.jit(rnn_forward)
    out = jax.block_until_ready(fwd(X, W, b))

    ref = rnn_reference(X, W, b)
    assert out.shape == (S, B, H)
    # bf16 matmul inputs (f32 accumulation) -> slightly looser tolerance vs f32 ref.
    max_err = float(jnp.max(jnp.abs(out - ref)))
    assert jnp.allclose(out, ref, atol=2e-2, rtol=2e-2), max_err

    print("KERNEL_OK")
</pallas_src>

<mosaic_0001>
module attributes {stable_mosaic.version = 11 : i64} {
  func.func @rnn_recurrence_kernel(%arg0: i32, %arg1: i32, %arg2: memref<8x8x128xbf16, #tpu.memory_space<vmem>>, %arg3: memref<128x128xbf16, #tpu.memory_space<vmem>>, %arg4: memref<128x128xbf16, #tpu.memory_space<vmem>>, %arg5: memref<1x128xf32, #tpu.memory_space<vmem>>, %arg6: memref<8x8x128xf32, #tpu.memory_space<vmem>>, %arg7: memref<8x128xbf16, #tpu.memory_space<vmem>>) attributes {dimension_semantics = [#tpu.dimension_semantics<parallel>, #tpu.dimension_semantics<arbitrary>], iteration_bounds = array<i64: 1, 1>, scalar_prefetch = 0 : i64, scratch_operands = 1 : i64, tpu.core_type = #tpu.core_type<tc>, window_params = [{transform_indices = @transform_0, window_bounds = array<i64: 8, 8, 128>}, {pipeline_mode = #tpu.pipeline_mode<synchronous>, transform_indices = @transform_1, window_bounds = array<i64: 128, 128>}, {pipeline_mode = #tpu.pipeline_mode<synchronous>, transform_indices = @transform_2, window_bounds = array<i64: 128, 128>}, {pipeline_mode = #tpu.pipeline_mode<synchronous>, transform_indices = @transform_3, window_bounds = array<i64: 1, 128>}, {transform_indices = @transform_4, window_bounds = array<i64: 8, 8, 128>}]} {
    %c0_i32 = arith.constant 0 : i32
    %0 = arith.cmpi eq, %arg1, %c0_i32 : i32
    %1 = arith.extui %0 : i1 to i32
    %c0_i32_0 = arith.constant 0 : i32
    %2 = arith.cmpi ne, %1, %c0_i32_0 : i32
    scf.if %2 {
      %cst_58 = arith.constant 0.000000e+00 : bf16
      %120 = vector.broadcast %cst_58 : bf16 to vector<8x128xbf16>
      %c0_59 = arith.constant 0 : index
      %c0_60 = arith.constant 0 : index
      %121 = vector.load %arg7[%c0_59, %c0_60] : memref<8x128xbf16, #tpu.memory_space<vmem>>, vector<8x128xbf16>
      tpu.vector_store %arg7[%c0_59, %c0_60], %120 {strides = array<i32>} : memref<8x128xbf16, #tpu.memory_space<vmem>>, vector<8x128xbf16>,
    } else {
    }
    %c0 = arith.constant 0 : index
    %c0_1 = arith.constant 0 : index
    %3 = vector.load %arg3[%c0, %c0_1] : memref<128x128xbf16, #tpu.memory_space<vmem>>, vector<128x128xbf16>
    %c0_2 = arith.constant 0 : index
    %c0_3 = arith.constant 0 : index
    %4 = vector.load %arg4[%c0_2, %c0_3] : memref<128x128xbf16, #tpu.memory_space<vmem>>, vector<128x128xbf16>
    %c0_4 = arith.constant 0 : index
    %c0_5 = arith.constant 0 : index
    %5 = vector.load %arg5[%c0_4, %c0_5] : memref<1x128xf32, #tpu.memory_space<vmem>>, vector<1x128xf32>
    %c0_6 = arith.constant 0 : index
    %c0_7 = arith.constant 0 : index
    %6 = vector.load %arg7[%c0_6, %c0_7] : memref<8x128xbf16, #tpu.memory_space<vmem>>, vector<8x128xbf16>
    %c0_i32_8 = arith.constant 0 : i32
    %7 = arith.index_cast %c0_i32_8 : i32 to index
    %c0_9 = arith.constant 0 : index
    %c0_10 = arith.constant 0 : index
    %8 = vector.load %arg2[%7, %c0_9, %c0_10] : memref<8x8x128xbf16, #tpu.memory_space<vmem>>, vector<1x8x128xbf16>
    %9 = vector.shape_cast %8 : vector<1x8x128xbf16> to vector<8x128xbf16>
    %cst = arith.constant dense<0.000000e+00> : vector<8x128xf32>
    %10 = tpu.matmul %9, %3, %cst {dimension_numbers = #tpu.dot_dimension_numbers<[1], [0], [0], [1], [0, 0, 1, 1], [], []>} : vector<8x128xbf16>, vector<128x128xbf16>, vector<8x128xf32> -> vector<8x128xf32>
    %cst_11 = arith.constant dense<0.000000e+00> : vector<8x128xf32>
    %11 = tpu.matmul %6, %4, %cst_11 {dimension_numbers = #tpu.dot_dimension_numbers<[1], [0], [0], [1], [0, 0, 1, 1], [], []>} : vector<8x128xbf16>, vector<128x128xbf16>, vector<8x128xf32> -> vector<8x128xf32>
    %12 = arith.addf %10, %11 : vector<8x128xf32>
    %13 = vector.broadcast %5 : vector<1x128xf32> to vector<8x128xf32>
    %14 = arith.addf %12, %13 : vector<8x128xf32>
    %15 = math.tanh %14 : vector<8x128xf32>
    %16 = arith.index_cast %c0_i32_8 : i32 to index
    %c0_12 = arith.constant 0 : index
    %c0_13 = arith.constant 0 : index
    %17 = vector.load %arg6[%16, %c0_12, %c0_13] : memref<8x8x128xf32, #tpu.memory_space<vmem>>, vector<1x8x128xf32>
    %18 = vector.shape_cast %17 : vector<1x8x128xf32> to vector<8x128xf32>
    %19 = vector.shape_cast %15 : vector<8x128xf32> to vector<1x8x128xf32>
    tpu.vector_store %arg6[%16, %c0_12, %c0_13], %19 {strides = array<i32>} : memref<8x8x128xf32, #tpu.memory_space<vmem>>, vector<1x8x128xf32>,
    %20 = arith.truncf %15 : vector<8x128xf32> to vector<8x128xbf16>
    %c1_i32 = arith.constant 1 : i32
    %21 = arith.index_cast %c1_i32 : i32 to index
    %c0_14 = arith.constant 0 : index
    %c0_15 = arith.constant 0 : index
    %22 = vector.load %arg2[%21, %c0_14, %c0_15] : memref<8x8x128xbf16, #tpu.memory_space<vmem>>, vector<1x8x128xbf16>
    %23 = vector.shape_cast %22 : vector<1x8x128xbf16> to vector<8x128xbf16>
    %cst_16 = arith.constant dense<0.000000e+00> : vector<8x128xf32>
    %24 = tpu.matmul %23, %3, %cst_16 {dimension_numbers = #tpu.dot_dimension_numbers<[1], [0], [0], [1], [0, 0, 1, 1], [], []>} : vector<8x128xbf16>, vector<128x128xbf16>, vector<8x128xf32> -> vector<8x128xf32>
    %cst_17 = arith.constant dense<0.000000e+00> : vector<8x128xf32>
    %25 = tpu.matmul %20, %4, %cst_17 {dimension_numbers = #tpu.dot_dimension_numbers<[1], [0], [0], [1], [0, 0, 1, 1], [], []>} : vector<8x128xbf16>, vector<128x128xbf16>, vector<8x128xf32> -> vector<8x128xf32>
    %26 = arith.addf %24, %25 : vector<8x128xf32>
    %27 = vector.broadcast %5 : vector<1x128xf32> to vector<8x128xf32>
    %28 = arith.addf %26, %27 : vector<8x128xf32>
    %29 = math.tanh %28 : vector<8x128xf32>
    %30 = arith.index_cast %c1_i32 : i32 to index
    %c0_18 = arith.constant 0 : index
    %c0_19 = arith.constant 0 : index
    %31 = vector.load %arg6[%30, %c0_18, %c0_19] : memref<8x8x128xf32, #tpu.memory_space<vmem>>, vector<1x8x128xf32>
    %32 = vector.shape_cast %31 : vector<1x8x128xf32> to vector<8x128xf32>
    %33 = vector.shape_cast %29 : vector<8x128xf32> to vector<1x8x128xf32>
    tpu.vector_store %arg6[%30, %c0_18, %c0_19], %33 {strides = array<i32>} : memref<8x8x128xf32, #tpu.memory_space<vmem>>, vector<1x8x128xf32>,
    %34 = arith.truncf %29 : vector<8x128xf32> to vector<8x128xbf16>
    %c2_i32 = arith.constant 2 : i32
    %35 = arith.index_cast %c2_i32 : i32 to index
    %c0_20 = arith.constant 0 : index
    %c0_21 = arith.constant 0 : index
    %36 = vector.load %arg2[%35, %c0_20, %c0_21] : memref<8x8x128xbf16, #tpu.memory_space<vmem>>, vector<1x8x128xbf16>
    %37 = vector.shape_cast %36 : vector<1x8x128xbf16> to vector<8x128xbf16>
    %cst_22 = arith.constant dense<0.000000e+00> : vector<8x128xf32>
    %38 = tpu.matmul %37, %3, %cst_22 {dimension_numbers = #tpu.dot_dimension_numbers<[1], [0], [0], [1], [0, 0, 1, 1], [], []>} : vector<8x128xbf16>, vector<128x128xbf16>, vector<8x128xf32> -> vector<8x128xf32>
    %cst_23 = arith.constant dense<0.000000e+00> : vector<8x128xf32>
    %39 = tpu.matmul %34, %4, %cst_23 {dimension_numbers = #tpu.dot_dimension_numbers<[1], [0], [0], [1], [0, 0, 1, 1], [], []>} : vector<8x128xbf16>, vector<128x128xbf16>, vector<8x128xf32> -> vector<8x128xf32>
    %40 = arith.addf %38, %39 : vector<8x128xf32>
    %41 = vector.broadcast %5 : vector<1x128xf32> to vector<8x128xf32>
    %42 = arith.addf %40, %41 : vector<8x128xf32>
    %43 = math.tanh %42 : vector<8x128xf32>
    %44 = arith.index_cast %c2_i32 : i32 to index
    %c0_24 = arith.constant 0 : index
    %c0_25 = arith.constant 0 : index
    %45 = vector.load %arg6[%44, %c0_24, %c0_25] : memref<8x8x128xf32, #tpu.memory_space<vmem>>, vector<1x8x128xf32>
    %46 = vector.shape_cast %45 : vector<1x8x128xf32> to vector<8x128xf32>
    %47 = vector.shape_cast %43 : vector<8x128xf32> to vector<1x8x128xf32>
    tpu.vector_store %arg6[%44, %c0_24, %c0_25], %47 {strides = array<i32>} : memref<8x8x128xf32, #tpu.memory_space<vmem>>, vector<1x8x128xf32>,
    %48 = arith.truncf %43 : vector<8x128xf32> to vector<8x128xbf16>
    %c3_i32 = arith.constant 3 : i32
    %49 = arith.index_cast %c3_i32 : i32 to index
    %c0_26 = arith.constant 0 : index
    %c0_27 = arith.constant 0 : index
    %50 = vector.load %arg2[%49, %c0_26, %c0_27] : memref<8x8x128xbf16, #tpu.memory_space<vmem>>, vector<1x8x128xbf16>
    %51 = vector.shape_cast %50 : vector<1x8x128xbf16> to vector<8x128xbf16>
    %cst_28 = arith.constant dense<0.000000e+00> : vector<8x128xf32>
    %52 = tpu.matmul %51, %3, %cst_28 {dimension_numbers = #tpu.dot_dimension_numbers<[1], [0], [0], [1], [0, 0, 1, 1], [], []>} : vector<8x128xbf16>, vector<128x128xbf16>, vector<8x128xf32> -> vector<8x128xf32>
    %cst_29 = arith.constant dense<0.000000e+00> : vector<8x128xf32>
    %53 = tpu.matmul %48, %4, %cst_29 {dimension_numbers = #tpu.dot_dimension_numbers<[1], [0], [0], [1], [0, 0, 1, 1], [], []>} : vector<8x128xbf16>, vector<128x128xbf16>, vector<8x128xf32> -> vector<8x128xf32>
    %54 = arith.addf %52, %53 : vector<8x128xf32>
    %55 = vector.broadcast %5 : vector<1x128xf32> to vector<8x128xf32>
    %56 = arith.addf %54, %55 : vector<8x128xf32>
    %57 = math.tanh %56 : vector<8x128xf32>
    %58 = arith.index_cast %c3_i32 : i32 to index
    %c0_30 = arith.constant 0 : index
    %c0_31 = arith.constant 0 : index
    %59 = vector.load %arg6[%58, %c0_30, %c0_31] : memref<8x8x128xf32, #tpu.memory_space<vmem>>, vector<1x8x128xf32>
    %60 = vector.shape_cast %59 : vector<1x8x128xf32> to vector<8x128xf32>
    %61 = vector.shape_cast %57 : vector<8x128xf32> to vector<1x8x128xf32>
    tpu.vector_store %arg6[%58, %c0_30, %c0_31], %61 {strides = array<i32>} : memref<8x8x128xf32, #tpu.memory_space<vmem>>, vector<1x8x128xf32>,
    %62 = arith.truncf %57 : vector<8x128xf32> to vector<8x128xbf16>
    %c4_i32 = arith.constant 4 : i32
    %63 = arith.index_cast %c4_i32 : i32 to index
    %c0_32 = arith.constant 0 : index
    %c0_33 = arith.constant 0 : index
    %64 = vector.load %arg2[%63, %c0_32, %c0_33] : memref<8x8x128xbf16, #tpu.memory_space<vmem>>, vector<1x8x128xbf16>
    %65 = vector.shape_cast %64 : vector<1x8x128xbf16> to vector<8x128xbf16>
    %cst_34 = arith.constant dense<0.000000e+00> : vector<8x128xf32>
    %66 = tpu.matmul %65, %3, %cst_34 {dimension_numbers = #tpu.dot_dimension_numbers<[1], [0], [0], [1], [0, 0, 1, 1], [], []>} : vector<8x128xbf16>, vector<128x128xbf16>, vector<8x128xf32> -> vector<8x128xf32>
    %cst_35 = arith.constant dense<0.000000e+00> : vector<8x128xf32>
    %67 = tpu.matmul %62, %4, %cst_35 {dimension_numbers = #tpu.dot_dimension_numbers<[1], [0], [0], [1], [0, 0, 1, 1], [], []>} : vector<8x128xbf16>, vector<128x128xbf16>, vector<8x128xf32> -> vector<8x128xf32>
    %68 = arith.addf %66, %67 : vector<8x128xf32>
    %69 = vector.broadcast %5 : vector<1x128xf32> to vector<8x128xf32>
    %70 = arith.addf %68, %69 : vector<8x128xf32>
    %71 = math.tanh %70 : vector<8x128xf32>
    %72 = arith.index_cast %c4_i32 : i32 to index
    %c0_36 = arith.constant 0 : index
    %c0_37 = arith.constant 0 : index
    %73 = vector.load %arg6[%72, %c0_36, %c0_37] : memref<8x8x128xf32, #tpu.memory_space<vmem>>, vector<1x8x128xf32>
    %74 = vector.shape_cast %73 : vector<1x8x128xf32> to vector<8x128xf32>
    %75 = vector.shape_cast %71 : vector<8x128xf32> to vector<1x8x128xf32>
    tpu.vector_store %arg6[%72, %c0_36, %c0_37], %75 {strides = array<i32>} : memref<8x8x128xf32, #tpu.memory_space<vmem>>, vector<1x8x128xf32>,
    %76 = arith.truncf %71 : vector<8x128xf32> to vector<8x128xbf16>
    %c5_i32 = arith.constant 5 : i32
    %77 = arith.index_cast %c5_i32 : i32 to index
    %c0_38 = arith.constant 0 : index
    %c0_39 = arith.constant 0 : index
    %78 = vector.load %arg2[%77, %c0_38, %c0_39] : memref<8x8x128xbf16, #tpu.memory_space<vmem>>, vector<1x8x128xbf16>
    %79 = vector.shape_cast %78 : vector<1x8x128xbf16> to vector<8x128xbf16>
    %cst_40 = arith.constant dense<0.000000e+00> : vector<8x128xf32>
    %80 = tpu.matmul %79, %3, %cst_40 {dimension_numbers = #tpu.dot_dimension_numbers<[1], [0], [0], [1], [0, 0, 1, 1], [], []>} : vector<8x128xbf16>, vector<128x128xbf16>, vector<8x128xf32> -> vector<8x128xf32>
    %cst_41 = arith.constant dense<0.000000e+00> : vector<8x128xf32>
    %81 = tpu.matmul %76, %4, %cst_41 {dimension_numbers = #tpu.dot_dimension_numbers<[1], [0], [0], [1], [0, 0, 1, 1], [], []>} : vector<8x128xbf16>, vector<128x128xbf16>, vector<8x128xf32> -> vector<8x128xf32>
    %82 = arith.addf %80, %81 : vector<8x128xf32>
    %83 = vector.broadcast %5 : vector<1x128xf32> to vector<8x128xf32>
    %84 = arith.addf %82, %83 : vector<8x128xf32>
    %85 = math.tanh %84 : vector<8x128xf32>
    %86 = arith.index_cast %c5_i32 : i32 to index
    %c0_42 = arith.constant 0 : index
    %c0_43 = arith.constant 0 : index
    %87 = vector.load %arg6[%86, %c0_42, %c0_43] : memref<8x8x128xf32, #tpu.memory_space<vmem>>, vector<1x8x128xf32>
    %88 = vector.shape_cast %87 : vector<1x8x128xf32> to vector<8x128xf32>
    %89 = vector.shape_cast %85 : vector<8x128xf32> to vector<1x8x128xf32>
    tpu.vector_store %arg6[%86, %c0_42, %c0_43], %89 {strides = array<i32>} : memref<8x8x128xf32, #tpu.memory_space<vmem>>, vector<1x8x128xf32>,
    %90 = arith.truncf %85 : vector<8x128xf32> to vector<8x128xbf16>
    %c6_i32 = arith.constant 6 : i32
    %91 = arith.index_cast %c6_i32 : i32 to index
    %c0_44 = arith.constant 0 : index
    %c0_45 = arith.constant 0 : index
    %92 = vector.load %arg2[%91, %c0_44, %c0_45] : memref<8x8x128xbf16, #tpu.memory_space<vmem>>, vector<1x8x128xbf16>
    %93 = vector.shape_cast %92 : vector<1x8x128xbf16> to vector<8x128xbf16>
    %cst_46 = arith.constant dense<0.000000e+00> : vector<8x128xf32>
    %94 = tpu.matmul %93, %3, %cst_46 {dimension_numbers = #tpu.dot_dimension_numbers<[1], [0], [0], [1], [0, 0, 1, 1], [], []>} : vector<8x128xbf16>, vector<128x128xbf16>, vector<8x128xf32> -> vector<8x128xf32>
    %cst_47 = arith.constant dense<0.000000e+00> : vector<8x128xf32>
    %95 = tpu.matmul %90, %4, %cst_47 {dimension_numbers = #tpu.dot_dimension_numbers<[1], [0], [0], [1], [0, 0, 1, 1], [], []>} : vector<8x128xbf16>, vector<128x128xbf16>, vector<8x128xf32> -> vector<8x128xf32>
    %96 = arith.addf %94, %95 : vector<8x128xf32>
    %97 = vector.broadcast %5 : vector<1x128xf32> to vector<8x128xf32>
    %98 = arith.addf %96, %97 : vector<8x128xf32>
    %99 = math.tanh %98 : vector<8x128xf32>
    %100 = arith.index_cast %c6_i32 : i32 to index
    %c0_48 = arith.constant 0 : index
    %c0_49 = arith.constant 0 : index
    %101 = vector.load %arg6[%100, %c0_48, %c0_49] : memref<8x8x128xf32, #tpu.memory_space<vmem>>, vector<1x8x128xf32>
    %102 = vector.shape_cast %101 : vector<1x8x128xf32> to vector<8x128xf32>
    %103 = vector.shape_cast %99 : vector<8x128xf32> to vector<1x8x128xf32>
    tpu.vector_store %arg6[%100, %c0_48, %c0_49], %103 {strides = array<i32>} : memref<8x8x128xf32, #tpu.memory_space<vmem>>, vector<1x8x128xf32>,
    %104 = arith.truncf %99 : vector<8x128xf32> to vector<8x128xbf16>
    %c7_i32 = arith.constant 7 : i32
    %105 = arith.index_cast %c7_i32 : i32 to index
    %c0_50 = arith.constant 0 : index
    %c0_51 = arith.constant 0 : index
    %106 = vector.load %arg2[%105, %c0_50, %c0_51] : memref<8x8x128xbf16, #tpu.memory_space<vmem>>, vector<1x8x128xbf16>
    %107 = vector.shape_cast %106 : vector<1x8x128xbf16> to vector<8x128xbf16>
    %cst_52 = arith.constant dense<0.000000e+00> : vector<8x128xf32>
    %108 = tpu.matmul %107, %3, %cst_52 {dimension_numbers = #tpu.dot_dimension_numbers<[1], [0], [0], [1], [0, 0, 1, 1], [], []>} : vector<8x128xbf16>, vector<128x128xbf16>, vector<8x128xf32> -> vector<8x128xf32>
    %cst_53 = arith.constant dense<0.000000e+00> : vector<8x128xf32>
    %109 = tpu.matmul %104, %4, %cst_53 {dimension_numbers = #tpu.dot_dimension_numbers<[1], [0], [0], [1], [0, 0, 1, 1], [], []>} : vector<8x128xbf16>, vector<128x128xbf16>, vector<8x128xf32> -> vector<8x128xf32>
    %110 = arith.addf %108, %109 : vector<8x128xf32>
    %111 = vector.broadcast %5 : vector<1x128xf32> to vector<8x128xf32>
    %112 = arith.addf %110, %111 : vector<8x128xf32>
    %113 = math.tanh %112 : vector<8x128xf32>
    %114 = arith.index_cast %c7_i32 : i32 to index
    %c0_54 = arith.constant 0 : index
    %c0_55 = arith.constant 0 : index
    %115 = vector.load %arg6[%114, %c0_54, %c0_55] : memref<8x8x128xf32, #tpu.memory_space<vmem>>, vector<1x8x128xf32>
    %116 = vector.shape_cast %115 : vector<1x8x128xf32> to vector<8x128xf32>
    %117 = vector.shape_cast %113 : vector<8x128xf32> to vector<1x8x128xf32>
    tpu.vector_store %arg6[%114, %c0_54, %c0_55], %117 {strides = array<i32>} : memref<8x8x128xf32, #tpu.memory_space<vmem>>, vector<1x8x128xf32>,
    %118 = arith.truncf %113 : vector<8x128xf32> to vector<8x128xbf16>
    %c8_i32 = arith.constant 8 : i32
    %c0_56 = arith.constant 0 : index
    %c0_57 = arith.constant 0 : index
    %119 = vector.load %arg7[%c0_56, %c0_57] : memref<8x128xbf16, #tpu.memory_space<vmem>>, vector<8x128xbf16>
    tpu.vector_store %arg7[%c0_56, %c0_57], %118 {strides = array<i32>} : memref<8x128xbf16, #tpu.memory_space<vmem>>, vector<8x128xbf16>,
    return
  }
  func.func @transform_0(%arg0: i32, %arg1: i32) -> (i32, i32, i32) {
    %c0_i32 = arith.constant 0 : i32
    %c0_i32_0 = arith.constant 0 : i32
    return %arg1, %arg0, %c0_i32 : i32, i32, i32
  }
  func.func @transform_1(%arg0: i32, %arg1: i32) -> (i32, i32) {
    %c0_i32 = arith.constant 0 : i32
    %c0_i32_0 = arith.constant 0 : i32
    %c0_i32_1 = arith.constant 0 : i32
    return %c0_i32, %c0_i32_0 : i32, i32
  }
  func.func @transform_2(%arg0: i32, %arg1: i32) -> (i32, i32) {
    %c0_i32 = arith.constant 0 : i32
    %c0_i32_0 = arith.constant 0 : i32
    %c0_i32_1 = arith.constant 0 : i32
    return %c0_i32, %c0_i32_0 : i32, i32
  }
  func.func @transform_3(%arg0: i32, %arg1: i32) -> (i32, i32) {
    %c0_i32 = arith.constant 0 : i32
    %c0_i32_0 = arith.constant 0 : i32
    %c0_i32_1 = arith.constant 0 : i32
    return %c0_i32, %c0_i32_0 : i32, i32
  }
  func.func @transform_4(%arg0: i32, %arg1: i32) -> (i32, i32, i32) {
    %c0_i32 = arith.constant 0 : i32
    %c0_i32_0 = arith.constant 0 : i32
    return %arg1, %arg0, %c0_i32 : i32, i32, i32
  }
}

</mosaic_0001>

<bundles_post_ra>
// kernel: rnn_forward.1
= control target key start
LH: loop header
LB: loop body
LE: loop exit
PB: predicated region body
PF: predicated region fallthrough
CT: control target
= control target key end

     0   :  { %v535_v2 = vmov 0   ;;  %s830_s2 = inlined_call_operand.vmem [shape: bf16[128,128], index: 2, kind: input, shape index: {}]   ;;  %s831_s1 = inlined_call_operand.vmem [shape: bf16[128,128], index: 1, kind: input, shape index: {}]   ;;  %s832_s0 = inlined_call_operand.vmem [shape: bf16[8,8,128], index: 0, kind: input, shape index: {}]   ;;  %s833_s3 = inlined_call_operand.vmem [shape: f32[1,128], index: 3, kind: input, shape index: {}]   ;;  %s834_s4 = inlined_call_operand.vmem [shape: f32[8,8,128], index: 4, kind: output, shape index: {}]  }
   0x1   :  { %v564_v0 = vld [vmem:[%s830_s2 + $0x38] sm:$0xff]  ;;  %22 = vst [vmem:[#allocation2] sm:$0xf] %v535_v2  ;;  %v576_v3 = vld [vmem:[%s830_s2 + $0x30] sm:$0xff]  ;;  %v590_v5 = vld [vmem:[%s830_s2 + $0x28] sm:$0xff] }
   0x2   :  { %v569_v1 = vld [vmem:[%s831_s1 + $0x38] sm:$0xff]  ;;  %106 = vmatpush.bf16.msra.mxu0 %v564_v0  ;;  %v581_v4 = vld [vmem:[%s831_s1 + $0x30] sm:$0xff]  ;;  %189 = vmatpush.bf16.msra.mxu2 %v564_v0  ;;  %v595_v6 = vld [vmem:[%s831_s1 + $0x28] sm:$0xff] }
   0x3   :  { %167 = vmatpush.bf16.msra.mxu1 %v569_v1  ;;  %202 = vmatpush.bf16.msra.mxu3 %v569_v1  ;;  %v604_v7 = vld [vmem:[%s830_s2 + $0x20] sm:$0xff]  ;;  %v618_v9 = vld [vmem:[%s830_s2 + $0x18] sm:$0xff]  ;;  %v632_v11 = vld [vmem:[%s830_s2 + $0x10] sm:$0xff] }
   0x4   :  { %v609_v8 = vld [vmem:[%s831_s1 + $0x20] sm:$0xff]  ;;  %v623_v10 = vld [vmem:[%s831_s1 + $0x18] sm:$0xff]  ;;  %v637_v12 = vld [vmem:[%s831_s1 + $0x10] sm:$0xff] }
   0x5   :  { %v646_v13 = vld [vmem:[%s830_s2 + $0x8] sm:$0xff]  ;;  %v660_v15 = vld [vmem:[%s830_s2] sm:$0xff]  ;;  %v493_v49 = vld [vmem:[%s832_s0 + $0x10] sm:$0xf] }
   0x6   :  { %107 = vmatpush.bf16.msra.mxu0 %v576_v3  ;;  %190 = vmatpush.bf16.msra.mxu2 %v576_v3  ;;  %v651_v14 = vld [vmem:[%s831_s1 + $0x8] sm:$0xff]  ;;  %v665_v16 = vld [vmem:[%s831_s1] sm:$0xff]  ;;  %v495_v58 = vld [vmem:[%s832_s0 + $0x14] sm:$0xf] }
   0x7   :  { %168 = vmatpush.bf16.msra.mxu1 %v581_v4  ;;  %203 = vmatpush.bf16.msra.mxu3 %v581_v4  ;;  %v57_v18 = vld [vmem:[%s832_s0] sm:$0xf]  ;;  %v487_v19 = vld [vmem:[%s832_s0 + $0x4] sm:$0xf]  ;;  %v489_v31 = vld [vmem:[%s832_s0 + $0x8] sm:$0xf] }
   0x8   :  { %v56_v17 = vld [vmem:[#allocation2] sm:$0xf]  ;;  %v491_v40 = vld [vmem:[%s832_s0 + $0xc] sm:$0xf] }
   0x9   :  { %v736_v20 = vld [vmem:[%s833_s3] ss:$0 sm:$0xff] }
   0xa   :  { %108 = vmatpush.bf16.msra.mxu0 %v590_v5  ;;  %191 = vmatpush.bf16.msra.mxu2 %v590_v5 }
   0xb   :  { %169 = vmatpush.bf16.msra.mxu1 %v595_v6  ;;  %204 = vmatpush.bf16.msra.mxu3 %v595_v6 }
   0xe   :  { %109 = vmatpush.bf16.msra.mxu0 %v604_v7  ;;  %192 = vmatpush.bf16.msra.mxu2 %v604_v7 }
   0xf   :  { %170 = vmatpush.bf16.msra.mxu1 %v609_v8  ;;  %205 = vmatpush.bf16.msra.mxu3 %v609_v8 }
  0x12   :  { %110 = vmatpush.bf16.msra.mxu0 %v618_v9  ;;  %193 = vmatpush.bf16.msra.mxu2 %v618_v9 }
  0x13   :  { %171 = vmatpush.bf16.msra.mxu1 %v623_v10  ;;  %206 = vmatpush.bf16.msra.mxu3 %v623_v10 }
  0x16   :  { %111 = vmatpush.bf16.msra.mxu0 %v632_v11  ;;  %194 = vmatpush.bf16.msra.mxu2 %v632_v11 }
  0x17   :  { %172 = vmatpush.bf16.msra.mxu1 %v637_v12  ;;  %207 = vmatpush.bf16.msra.mxu3 %v637_v12 }
  0x1a   :  { %112 = vmatpush.bf16.msra.mxu0 %v646_v13  ;;  %195 = vmatpush.bf16.msra.mxu2 %v646_v13 }
  0x1b   :  { %173 = vmatpush.bf16.msra.mxu1 %v651_v14  ;;  %208 = vmatpush.bf16.msra.mxu3 %v651_v14 }
  0x1e   :  { %113 = vmatpush.bf16.msra.mxu0 %v660_v15  ;;  %196 = vmatpush.bf16.msra.mxu2 %v660_v15 }
  0x1f   :  { %174 = vmatpush.bf16.msra.mxu1 %v665_v16  ;;  %209 = vmatpush.bf16.msra.mxu3 %v665_v16 }
  0x21   :  { %114 = vmatmul.bf16.vlgmr.msra.gmra.mxu0 %v56_v17 }
  0x22   :  { %222 = vmatpush.bf16.msrb.mxu0 %v564_v0  ;;  %175 = vmatmul.bf16.vlgmr.msra.gmra.mxu1 %v57_v18 }
  0x23   :  { %235 = vmatpush.bf16.msrb.mxu1 %v569_v1  ;;  %268 = vmatpush.bf16.msrb.mxu3 %v569_v1 }
  0x24   :  { %255 = vmatpush.bf16.msrb.mxu2 %v564_v0  ;;  %210 = vmatmul.bf16.vlgmr.msra.gmra.mxu3 %v487_v19 }
  0x26   :  { %223 = vmatpush.bf16.msrb.mxu0 %v576_v3 }
  0x27   :  { %236 = vmatpush.bf16.msrb.mxu1 %v581_v4  ;;  %269 = vmatpush.bf16.msrb.mxu3 %v581_v4 }
  0x28   :  { %256 = vmatpush.bf16.msrb.mxu2 %v576_v3 }
  0x2a   :  { %224 = vmatpush.bf16.msrb.mxu0 %v590_v5 }
  0x2b   :  { %237 = vmatpush.bf16.msrb.mxu1 %v595_v6  ;;  %270 = vmatpush.bf16.msrb.mxu3 %v595_v6 }
  0x2c   :  { %257 = vmatpush.bf16.msrb.mxu2 %v590_v5 }
  0x2e   :  { %225 = vmatpush.bf16.msrb.mxu0 %v604_v7 }
  0x2f   :  { %238 = vmatpush.bf16.msrb.mxu1 %v609_v8  ;;  %271 = vmatpush.bf16.msrb.mxu3 %v609_v8 }
  0x30   :  { %258 = vmatpush.bf16.msrb.mxu2 %v604_v7 }
  0x32   :  { %226 = vmatpush.bf16.msrb.mxu0 %v618_v9 }
  0x33   :  { %239 = vmatpush.bf16.msrb.mxu1 %v623_v10  ;;  %272 = vmatpush.bf16.msrb.mxu3 %v623_v10 }
  0x34   :  { %259 = vmatpush.bf16.msrb.mxu2 %v618_v9 }
  0x36   :  { %227 = vmatpush.bf16.msrb.mxu0 %v632_v11 }
  0x37   :  { %240 = vmatpush.bf16.msrb.mxu1 %v637_v12  ;;  %273 = vmatpush.bf16.msrb.mxu3 %v637_v12 }
  0x38   :  { %260 = vmatpush.bf16.msrb.mxu2 %v632_v11 }
  0x3a   :  { %228 = vmatpush.bf16.msrb.mxu0 %v646_v13 }
  0x3b   :  { %241 = vmatpush.bf16.msrb.mxu1 %v651_v14  ;;  %274 = vmatpush.bf16.msrb.mxu3 %v651_v14 }
  0x3c   :  { %261 = vmatpush.bf16.msrb.mxu2 %v646_v13 }
  0x3e   :  { %229 = vmatpush.bf16.msrb.mxu0 %v660_v15 }
  0x3f   :  { %242 = vmatpush.bf16.msrb.mxu1 %v665_v16  ;;  %275 = vmatpush.bf16.msrb.mxu3 %v665_v16 }
  0x40   :  { %262 = vmatpush.bf16.msrb.mxu2 %v660_v15 }
  0x42   :  { %288 = vmatpush.bf16.msra.mxu0 %v564_v0  ;;  %243 = vmatmul.bf16.vlgmr.msrb.gmra.mxu1 %v489_v31 }
  0x43   :  { %301 = vmatpush.bf16.msra.mxu1 %v569_v1  ;;  %334 = vmatpush.bf16.msra.mxu3 %v569_v1 }
  0x44   :  { %276 = vmatmul.bf16.vlgmr.msrb.gmra.mxu3 %v491_v40 }
  0x46   :  { %289 = vmatpush.bf16.msra.mxu0 %v576_v3 }
  0x47   :  { %302 = vmatpush.bf16.msra.mxu1 %v581_v4  ;;  %335 = vmatpush.bf16.msra.mxu3 %v581_v4 }
  0x4a   :  { %290 = vmatpush.bf16.msra.mxu0 %v590_v5 }
  0x4b   :  { %303 = vmatpush.bf16.msra.mxu1 %v595_v6  ;;  %336 = vmatpush.bf16.msra.mxu3 %v595_v6 }
  0x4e   :  { %291 = vmatpush.bf16.msra.mxu0 %v604_v7 }
  0x4f   :  { %304 = vmatpush.bf16.msra.mxu1 %v609_v8  ;;  %337 = vmatpush.bf16.msra.mxu3 %v609_v8 }
  0x52   :  { %292 = vmatpush.bf16.msra.mxu0 %v618_v9 }
  0x53   :  { %305 = vmatpush.bf16.msra.mxu1 %v623_v10  ;;  %338 = vmatpush.bf16.msra.mxu3 %v623_v10 }
  0x56   :  { %293 = vmatpush.bf16.msra.mxu0 %v632_v11 }
  0x57   :  { %306 = vmatpush.bf16.msra.mxu1 %v637_v12  ;;  %339 = vmatpush.bf16.msra.mxu3 %v637_v12 }
  0x5a   :  { %294 = vmatpush.bf16.msra.mxu0 %v646_v13 }
  0x5b   :  { %307 = vmatpush.bf16.msra.mxu1 %v651_v14  ;;  %340 = vmatpush.bf16.msra.mxu3 %v651_v14 }
  0x5e   :  { %295 = vmatpush.bf16.msra.mxu0 %v660_v15 }
  0x5f   :  { %308 = vmatpush.bf16.msra.mxu1 %v665_v16  ;;  %341 = vmatpush.bf16.msra.mxu3 %v665_v16 }
  0x62   :  { %309 = vmatmul.bf16.vlgmr.msra.gmra.mxu1 %v493_v49  ;;  %342 = vmatmul.bf16.vlgmr.msra.gmra.mxu3 %v495_v58 }
  0x63   :  { %367 = vmatpush.bf16.msrb.mxu1 %v569_v1  ;;  %400 = vmatpush.bf16.msrb.mxu3 %v569_v1 }
  0x67   :  { %368 = vmatpush.bf16.msrb.mxu1 %v581_v4  ;;  %401 = vmatpush.bf16.msrb.mxu3 %v581_v4 }
  0x6b   :  { %369 = vmatpush.bf16.msrb.mxu1 %v595_v6  ;;  %402 = vmatpush.bf16.msrb.mxu3 %v595_v6 }
  0x6f   :  { %370 = vmatpush.bf16.msrb.mxu1 %v609_v8  ;;  %403 = vmatpush.bf16.msrb.mxu3 %v609_v8 }
  0x73   :  { %371 = vmatpush.bf16.msrb.mxu1 %v623_v10  ;;  %404 = vmatpush.bf16.msrb.mxu3 %v623_v10 }
  0x77   :  { %372 = vmatpush.bf16.msrb.mxu1 %v637_v12  ;;  %405 = vmatpush.bf16.msrb.mxu3 %v637_v12  ;;  %v499_v12 = vld [vmem:[%s832_s0 + $0x1c] sm:$0xf] }
  0x7b   :  { %373 = vmatpush.bf16.msrb.mxu1 %v651_v14  ;;  %406 = vmatpush.bf16.msrb.mxu3 %v651_v14 }
  0x7f   :  { %374 = vmatpush.bf16.msrb.mxu1 %v665_v16  ;;  %407 = vmatpush.bf16.msrb.mxu3 %v665_v16 }
  0x82   :  { %408 = vmatmul.bf16.vlgmr.msrb.gmra.mxu3 %v499_v12 }
  0x9e   :  { %v115_v21 = vpop.f32.mrf.mxu0 }
  0x9f   :  { %v176_v22 = vpop.f32.mrf.mxu1 }
  0xa0   :  { %v177_v23 = vadd.f32 %v176_v22, %v115_v21 }
  0xa2   :  { %v183_v24 = vadd.f32 %v736_v20, %v177_v23 }
  0xa4   :  { %519 = vtanh.f32 %v183_v24 }
  0xa6   :  { %v117_v25 = vpop.f32.mrf.mxu0 }
  0xa7   :  { %v178_v26 = vpop.f32.mrf.mxu1  ;;  %v211_v29 = vpop.f32.mrf.mxu3 }
  0xaa   :  { %v520_v27 = vpop.eup %519 }
  0xab   :  { %185 = vst [vmem:[%s834_s4] sm:$0xff] %v520_v27  ;;  %v186_v28 = vpack.c.bf16 %v520_v27, %v520_v27 }
  0xad   :  { %197 = vmatmul.bf16.vlgmr.msra.gmra.mxu2 %v186_v28 }
  0xae   :  { %321 = vmatpush.bf16.msra.mxu2 %v564_v0 }
  0xaf   :  { %v213_v30 = vpop.f32.mrf.mxu3 }
  0xb2   :  { %322 = vmatpush.bf16.msra.mxu2 %v576_v3 }
  0xb6   :  { %323 = vmatpush.bf16.msra.mxu2 %v590_v5 }
  0xba   :  { %324 = vmatpush.bf16.msra.mxu2 %v604_v7 }
  0xbe   :  { %325 = vmatpush.bf16.msra.mxu2 %v618_v9 }
  0xbf   :  { %v244_v38 = vpop.f32.mrf.mxu1 }
  0xc2   :  { %326 = vmatpush.bf16.msra.mxu2 %v632_v11 }
  0xc6   :  { %327 = vmatpush.bf16.msra.mxu2 %v646_v13 }
  0xc7   :  { %v246_v39 = vpop.f32.mrf.mxu1  ;;  %v277_v47 = vpop.f32.mrf.mxu3 }
  0xca   :  { %328 = vmatpush.bf16.msra.mxu2 %v660_v15 }
  0xcf   :  { %v279_v48 = vpop.f32.mrf.mxu3 }
  0xdf   :  { %v310_v56 = vpop.f32.mrf.mxu1 }
  0xe5   :  { %v343_v1 = vpop.f32.mrf.mxu3 }
  0xe7   :  { %v312_v57 = vpop.f32.mrf.mxu1 }
  0xed   :  { %v345_v2 = vpop.f32.mrf.mxu3 }
 0x105   :  { %v409_v19 = vpop.f32.mrf.mxu3 }
 0x10d   :  { %v411_v21 = vpop.f32.mrf.mxu3 }
 0x130   :  { %v198_v32 = vpop.f32.mrf.mxu2 }
 0x131   :  { %v212_v33 = vadd.f32 %v211_v29, %v198_v32 }
 0x133   :  { %v215_v34 = vadd.f32 %v736_v20, %v212_v33 }
 0x135   :  { %521 = vtanh.f32 %v215_v34 }
 0x138   :  { %v200_v35 = vpop.f32.mrf.mxu2 }
 0x13b   :  { %v522_v36 = vpop.eup %521 }
 0x13c   :  { %488 = vst [vmem:[%s834_s4 + $0x8] sm:$0xff] %v522_v36  ;;  %v219_v37 = vpack.c.bf16 %v522_v36, %v522_v36 }
 0x13e   :  { %230 = vmatmul.bf16.vlgmr.msrb.gmra.mxu0 %v219_v37 }
 0x13f   :  { %354 = vmatpush.bf16.msrb.mxu0 %v564_v0 }
 0x143   :  { %355 = vmatpush.bf16.msrb.mxu0 %v576_v3 }
 0x147   :  { %356 = vmatpush.bf16.msrb.mxu0 %v590_v5 }
 0x14b   :  { %357 = vmatpush.bf16.msrb.mxu0 %v604_v7 }
 0x14f   :  { %358 = vmatpush.bf16.msrb.mxu0 %v618_v9 }
 0x153   :  { %359 = vmatpush.bf16.msrb.mxu0 %v632_v11 }
 0x157   :  { %360 = vmatpush.bf16.msrb.mxu0 %v646_v13 }
 0x15b   :  { %361 = vmatpush.bf16.msrb.mxu0 %v660_v15 }
 0x1bb   :  { %v231_v41 = vpop.f32.mrf.mxu0 }
 0x1bc   :  { %v245_v42 = vadd.f32 %v244_v38, %v231_v41 }
 0x1be   :  { %v248_v43 = vadd.f32 %v736_v20, %v245_v42 }
 0x1c0   :  { %523 = vtanh.f32 %v248_v43 }
 0x1c3   :  { %v233_v44 = vpop.f32.mrf.mxu0 }
 0x1c6   :  { %v524_v45 = vpop.eup %523 }
 0x1c7   :  { %490 = vst [vmem:[%s834_s4 + $0x10] sm:$0xff] %v524_v45  ;;  %v252_v46 = vpack.c.bf16 %v524_v45, %v524_v45 }
 0x1c9   :  { %263 = vmatmul.bf16.vlgmr.msrb.gmra.mxu2 %v252_v46 }
 0x1ca   :  { %387 = vmatpush.bf16.msrb.mxu2 %v564_v0 }
 0x1ce   :  { %388 = vmatpush.bf16.msrb.mxu2 %v576_v3  ;;  %v497_v3 = vld [vmem:[%s832_s0 + $0x18] sm:$0xf] }
 0x1cf   :  { %375 = vmatmul.bf16.vlgmr.msrb.gmra.mxu1 %v497_v3 }
 0x1d2   :  { %389 = vmatpush.bf16.msrb.mxu2 %v590_v5 }
 0x1d6   :  { %390 = vmatpush.bf16.msrb.mxu2 %v604_v7 }
 0x1da   :  { %391 = vmatpush.bf16.msrb.mxu2 %v618_v9 }
 0x1de   :  { %392 = vmatpush.bf16.msrb.mxu2 %v632_v11 }
 0x1e2   :  { %393 = vmatpush.bf16.msrb.mxu2 %v646_v13 }
 0x1e6   :  { %394 = vmatpush.bf16.msrb.mxu2 %v660_v15 }
 0x24c   :  { %v264_v50 = vpop.f32.mrf.mxu2  ;;  %v376_v10 = vpop.f32.mrf.mxu1 }
 0x24d   :  { %v278_v51 = vadd.f32 %v277_v47, %v264_v50 }
 0x24f   :  { %v281_v52 = vadd.f32 %v736_v20, %v278_v51 }
 0x251   :  { %525 = vtanh.f32 %v281_v52 }
 0x254   :  { %v266_v53 = vpop.f32.mrf.mxu2  ;;  %v378_v11 = vpop.f32.mrf.mxu1 }
 0x257   :  { %v526_v54 = vpop.eup %525 }
 0x258   :  { %492 = vst [vmem:[%s834_s4 + $0x18] sm:$0xff] %v526_v54  ;;  %v285_v55 = vpack.c.bf16 %v526_v54, %v526_v54 }
 0x25a   :  { %296 = vmatmul.bf16.vlgmr.msra.gmra.mxu0 %v285_v55 }
 0x2d7   :  { %v297_v59 = vpop.f32.mrf.mxu0 }
 0x2d8   :  { %v311_v60 = vadd.f32 %v310_v56, %v297_v59 }
 0x2da   :  { %v314_v61 = vadd.f32 %v736_v20, %v311_v60 }
 0x2dc   :  { %527 = vtanh.f32 %v314_v61 }
 0x2df   :  { %v299_v62 = vpop.f32.mrf.mxu0 }
 0x2e2   :  { %v528_v63 = vpop.eup %527 }
 0x2e3   :  { %494 = vst [vmem:[%s834_s4 + $0x20] sm:$0xff] %v528_v63  ;;  %v318_v0 = vpack.c.bf16 %v528_v63, %v528_v63 }
 0x2e5   :  { %329 = vmatmul.bf16.vlgmr.msra.gmra.mxu2 %v318_v0 }
 0x368   :  { %v330_v4 = vpop.f32.mrf.mxu2 }
 0x369   :  { %v344_v5 = vadd.f32 %v343_v1, %v330_v4 }
 0x36b   :  { %v347_v6 = vadd.f32 %v736_v20, %v344_v5 }
 0x36d   :  { %529 = vtanh.f32 %v347_v6 }
 0x370   :  { %v332_v7 = vpop.f32.mrf.mxu2 }
 0x373   :  { %v530_v8 = vpop.eup %529 }
 0x374   :  { %496 = vst [vmem:[%s834_s4 + $0x28] sm:$0xff] %v530_v8  ;;  %v351_v9 = vpack.c.bf16 %v530_v8, %v530_v8 }
 0x376   :  { %362 = vmatmul.bf16.vlgmr.msrb.gmra.mxu0 %v351_v9 }
 0x3f3   :  { %v363_v13 = vpop.f32.mrf.mxu0 }
 0x3f4   :  { %v377_v14 = vadd.f32 %v376_v10, %v363_v13 }
 0x3f6   :  { %v380_v15 = vadd.f32 %v736_v20, %v377_v14 }
 0x3f8   :  { %531 = vtanh.f32 %v380_v15 }
 0x3fb   :  { %v365_v16 = vpop.f32.mrf.mxu0 }
 0x3fe   :  { %v532_v17 = vpop.eup %531 }
 0x3ff   :  { %498 = vst [vmem:[%s834_s4 + $0x30] sm:$0xff] %v532_v17  ;;  %v384_v18 = vpack.c.bf16 %v532_v17, %v532_v17 }
 0x401   :  { %395 = vmatmul.bf16.vlgmr.msrb.gmra.mxu2 %v384_v18 }
 0x484   :  { %v396_v22 = vpop.f32.mrf.mxu2 }
 0x485   :  { %v410_v23 = vadd.f32 %v409_v19, %v396_v22 }
 0x487   :  { %v413_v24 = vadd.f32 %v736_v20, %v410_v23 }
 0x489   :  { %533 = vtanh.f32 %v413_v24 }
 0x48c   :  { %v398_v25 = vpop.f32.mrf.mxu2 }
 0x48f   :  { %v534_v26 = vpop.eup %533 }
 0x490   :  { %500 = vst [vmem:[%s834_s4 + $0x38] sm:$0xff] %v534_v26  ;;  %v417_v27 = vpack.c.bf16 %v534_v26, %v534_v26 }
 0x492   :  { %418 = vst [vmem:[#allocation2] sm:$0xf] %v417_v27 }

</bundles_post_ra>
